<compile_context>
chip_gen: v5e
topology: v5e:2x2
jax: 0.10.0
libtpu: 0.0.40
codegen_flags: <defaults>
</compile_context>

<pallas_src>
import math

import jax
import jax.numpy as jnp
from jax.experimental import pallas as pl
from jax.experimental.pallas import tpu as pltpu

EPS = 1e-8          # module-level eps (sine clamp)
NORM_EPS = 1e-12    # torch F.normalize default eps
NEG_BIG = -1e30     # effectively -inf for masked (padding) logits


# --------------------------------------------------------------------------- #
# Kernel
# --------------------------------------------------------------------------- #
def _make_adaface_kernel(*, c_tile, num_classes, ragged):
    """Online log-sum-exp over streamed class tiles of pre-summed prototypes."""

    def kernel(e_ref, tgt_ref, lab_ref, psum_ref, rowloss_ref, m_ref, l_ref):
        j = pl.program_id(1)                      # class-tile index (reduction)
        n_ct = pl.num_programs(1)

        @pl.when(j == 0)
        def _init():
            m_ref[...] = jnp.full(m_ref.shape, NEG_BIG, m_ref.dtype)
            l_ref[...] = jnp.zeros(l_ref.shape, l_ref.dtype)

        # Off-target logits for this class tile:
        #   logits[b, c] = (s/K) * sum_k <e_hat[b], p_hat[k, c]>
        # e_ref already carries the normalization and the s/K scale (bf16);
        # psum_ref is the bf16 pre-summed normalized prototype tile.
        logits = jax.lax.dot_general(
            e_ref[...], psum_ref[...],
            dimension_numbers=(((1,), (1,)), ((), ())),
            preferred_element_type=jnp.float32)               # [tb, ct] f32

        # Global class index of each logit column (broadcast (1, ct) iota).
        col = (jax.lax.broadcasted_iota(jnp.int32, (1, c_tile), 1)
               + j * c_tile)                                  # [1, ct]
        tmask = col == lab_ref[...]                           # [tb, ct] bool

        # Splice in the exact (wrapper-computed) margin logit at the target
        # column of each row; O(1) full-tile select, no masked reductions.
        logits = jnp.where(tmask, tgt_ref[...], logits)
        if ragged:  # trace-time flag: only emitted when the last tile is ragged
            logits = jnp.where(col < num_classes, logits, NEG_BIG)

        # Online log-sum-exp across class tiles (flash-softmax style).
        m_prev = m_ref[...]
        m_new = jnp.maximum(m_prev, jnp.max(logits, axis=1, keepdims=True))
        l_ref[...] = (l_ref[...] * jnp.exp(m_prev - m_new)
                      + jnp.sum(jnp.exp(logits - m_new), axis=1, keepdims=True))
        m_ref[...] = m_new

        @pl.when(j == n_ct - 1)
        def _finalize():
            # per-row cross entropy:  lse - target_logit
            rowloss_ref[...] = (m_ref[...] + jnp.log(l_ref[...])) - tgt_ref[...]

    return kernel


# --------------------------------------------------------------------------- #
# Tiling heuristics
# --------------------------------------------------------------------------- #
def _vmem_estimate(tb, ct, D):
    proto = 2 * ct * D * 2                 # double-buffered bf16 prototype tile
    emb = 2 * tb * D * 2                   # bf16 embeddings (2 bufs)
    small = 2 * tb * (4 + 4 + 4) + 2 * tb * 4   # tgt / labels / out / m,l scratch
    temps = 5 * tb * ct * 4                # [tb, ct] f32 temporaries / spills
    return proto + emb + small + temps


def _pick_batch_tile(B, D, ct, budget_bytes):
    cands = [t for t in range(B, 0, -1)
             if B % t == 0 and (t % 8 == 0 or t == B)]
    fitting = [t for t in cands if _vmem_estimate(t, ct, D) <= budget_bytes]
    if not fitting:
        fitting = [cands[-1]]
    if B >= 512:
        # Prefer >= 2 batch tiles so the "parallel" axis can shard across the
        # two TensorCores on v7x (and still re-stream prototypes only 2x).
        two_plus = [t for t in fitting if t <= B // 2]
        if two_plus:
            return two_plus[0]
    return fitting[0]


# --------------------------------------------------------------------------- #
# Forward wrapper
# --------------------------------------------------------------------------- #
def adaface_loss_forward(embeddings, labels, prototypes, *, s=64.0,
                         angle_margin=0.5, additive_margin=0.0, h=0.33,
                         bn_eps=1e-5, class_tile=512, batch_tile=None,
                         vmem_budget_bytes=32 << 20):
    """AdaFaceLoss.forward (training mode, use_class_weights=False,
    use_focal_loss=False, labels_onehot=None).  Returns (loss, [-1.], [-1.])."""
    B, D = embeddings.shape
    K, N, D2 = prototypes.shape
    assert D == D2, "embedding size mismatch"

    labels = labels.astype(jnp.int32)
    e32 = embeddings.astype(jnp.float32)
    p32 = prototypes.astype(jnp.float32)

    # ---- AdaFace per-sample margin schedule (tiny [B]-vector math) ---------
    # g = clamp(BatchNorm1d(||e||, affine=False, train) / h, -1, 1)
    norm = jnp.sqrt(jnp.sum(e32 * e32, axis=1))
    mean = jnp.mean(norm)
    var = jnp.mean(jnp.square(norm - mean))            # biased (train-mode BN)
    g = jnp.clip((norm - mean) * jax.lax.rsqrt(var + bn_eps) / h, -1.0, 1.0)
    g_angle = -angle_margin * g
    cos_m = jnp.cos(g_angle)
    sin_m = jnp.sin(g_angle)
    add_m = additive_margin * g + additive_margin
    # TODO(synk): BatchNorm1d running-stat (momentum) update and the eval-mode
    # (is_eval) margin path are stateful training bookkeeping, not done here.

    # ---- normalization + subcenter pre-sum (all outside the kernel) --------
    inv_e = 1.0 / jnp.maximum(norm, NORM_EPS)
    e_hat = e32 * inv_e[:, None]                                       # [B, D]
    p_hat = p32 * jax.lax.rsqrt(
        jnp.maximum(jnp.sum(p32 * p32, axis=-1, keepdims=True),
                    NORM_EPS * NORM_EPS))                              # [K,N,D]
    p_sum = jnp.sum(p_hat, axis=0)                                     # [N, D]

    # Exact (f32) per-k target cosines -> per-row margin logit (O(B*K*D)).
    p_t = p_hat[:, labels, :]                                          # [K,B,D]
    cos_t = jnp.einsum('kbd,bd->bk', p_t, e_hat)                       # [B, K]
    sine_t = jnp.clip(jnp.sqrt(jnp.maximum(1.0 - cos_t * cos_t, EPS)),
                      EPS, 1.0 - EPS)
    phi_t = cos_m[:, None] * cos_t - sin_m[:, None] * sine_t - add_m[:, None]
    tgt_logit = ((s / K) * jnp.sum(phi_t, axis=1, keepdims=True)
                 ).astype(jnp.float32)                                 # [B, 1]

    # MXU operands: fold s/K into the normalized embeddings, cast to bf16 once.
    e_scaled = (e_hat * (s / K)).astype(jnp.bfloat16)                  # [B, D]
    psum_bf = p_sum.astype(jnp.bfloat16)                               # [N, D]

    # ---- tiling -------------------------------------------------------------
    if class_tile >= N or class_tile % 8 != 0:
        ct = N                                          # single class tile
    else:
        ct = class_tile
    n_pad = ((N + ct - 1) // ct) * ct
    ragged = n_pad != N
    if ragged:
        psum_bf = jnp.pad(psum_bf, ((0, n_pad - N), (0, 0)))

    if batch_tile is not None:
        tb = batch_tile
    else:
        tb = _pick_batch_tile(B, D, ct, vmem_budget_bytes)
    assert B % tb == 0 and (tb % 8 == 0 or tb == B), "bad batch tile"

    grid = (B // tb, n_pad // ct)
    vmem_limit = int(min(48 << 20, max(2 * _vmem_estimate(tb, ct, D), 16 << 20)))

    kernel = _make_adaface_kernel(c_tile=ct, num_classes=N, ragged=ragged)

    cost = pl.CostEstimate(
        flops=2 * B * n_pad * D,
        transcendentals=B * n_pad,
        bytes_accessed=int(psum_bf.size * 2 * (B // tb)
                           + e_scaled.size * 2 + B * (4 + 4 + 4)))

    per_row = pl.pallas_call(
        kernel,
        out_shape=jax.ShapeDtypeStruct((B, 1), jnp.float32),
        grid=grid,
        in_specs=[
            pl.BlockSpec((tb, D), lambda i, j: (i, 0)),    # scaled embeddings (resident)
            pl.BlockSpec((tb, 1), lambda i, j: (i, 0)),    # target margin logit
            pl.BlockSpec((tb, 1), lambda i, j: (i, 0)),    # int32 labels
            pl.BlockSpec((ct, D), lambda i, j: (j, 0)),    # streamed prototype-sum tile
        ],
        out_specs=pl.BlockSpec((tb, 1), lambda i, j: (i, 0)),
        scratch_shapes=[pltpu.VMEM((tb, 1), jnp.float32)] * 2,   # m, l
        compiler_params=pltpu.CompilerParams(
            dimension_semantics=("parallel", "arbitrary"),
            vmem_limit_bytes=vmem_limit),
        cost_estimate=cost,
    )(e_scaled, tgt_logit, labels[:, None], psum_bf)

    loss = jnp.mean(per_row[:, 0])
    return loss, jnp.array([-1.0], jnp.float32), jnp.array([-1.0], jnp.float32)


# --------------------------------------------------------------------------- #
# Pure-JAX f32 reference (module semantics, per-row)
# --------------------------------------------------------------------------- #
def adaface_loss_reference(embeddings, labels, prototypes, *, s=64.0,
                           angle_margin=0.5, additive_margin=0.0, h=0.33,
                           bn_eps=1e-5):
    e32 = embeddings.astype(jnp.float32)
    p32 = prototypes.astype(jnp.float32)
    K, N, D = p32.shape
    norm = jnp.sqrt(jnp.sum(e32 * e32, axis=1))
    mean = jnp.mean(norm)
    var = jnp.mean(jnp.square(norm - mean))
    g = jnp.clip((norm - mean) * jax.lax.rsqrt(var + bn_eps) / h, -1.0, 1.0)
    cos_m = jnp.cos(-angle_margin * g)[:, None, None]
    sin_m = jnp.sin(-angle_margin * g)[:, None, None]
    add_m = (additive_margin * g + additive_margin)[:, None, None]

    e_hat = e32 * (1.0 / jnp.maximum(norm, NORM_EPS))[:, None]
    p_hat = p32 * jax.lax.rsqrt(
        jnp.maximum(jnp.sum(p32 * p32, axis=-1, keepdims=True),
                    NORM_EPS * NORM_EPS))
    cos = jnp.einsum('bd,knd->bnk', e_hat, p_hat)                   # [B, N, K]
    sine = jnp.clip(jnp.sqrt(jnp.maximum(1.0 - cos * cos, EPS)), EPS, 1.0 - EPS)
    phi = cos_m * cos - sin_m * sine - add_m
    onehot = jax.nn.one_hot(labels, N, dtype=jnp.float32)[:, :, None]
    out = jnp.mean((onehot * phi + (1.0 - onehot) * cos) * s, axis=2)  # [B, N]
    lse = jax.scipy.special.logsumexp(out, axis=1)
    tgt = jnp.take_along_axis(out, labels[:, None], axis=1)[:, 0]
    return jnp.mean(lse - tgt)


# --------------------------------------------------------------------------- #
# Glue
# --------------------------------------------------------------------------- #
def linear_sequence_encode(labels_list):
    """LinearSequenceEncoder.encode_list — raw labels -> contiguous ints in
    order of first appearance (host-side Python, not kernel work)."""
    mapping = {}
    out = []
    for lab in labels_list:
        if lab not in mapping:
            mapping[lab] = len(mapping)
        out.append(mapping[lab])
    return out


def xavier_uniform(key, shape):
    """torch.nn.init.xavier_uniform_ equivalent for the [K, C, D] parameter."""
    receptive = 1
    for d in shape[2:]:
        receptive *= d
    fan_in = shape[1] * receptive
    fan_out = shape[0] * receptive
    bound = math.sqrt(6.0 / (fan_in + fan_out))
    return jax.random.uniform(key, shape, jnp.float32, -bound, bound)


if __name__ == "__main__":
    embedding_size = 128
    num_classes = 182      # module default
    k_subcenters = 2       # module default
    batch_size = 8

    key = jax.random.PRNGKey(0)
    k_emb, k_proto, k_lab = jax.random.split(key, 3)

    embeddings = jax.random.normal(k_emb, (batch_size, embedding_size),
                                   dtype=jnp.float32)
    raw_labels = [int(x) for x in
                  jax.random.randint(k_lab, (batch_size,), 0, num_classes)]
    labels = jnp.array(linear_sequence_encode(raw_labels), dtype=jnp.int32)

    # Parameter [k_subcenters, num_classes, embedding_size]; stored bf16 so the
    # dominant HBM stream is half-width (cast once at init time).
    prototypes = xavier_uniform(
        k_proto, (k_subcenters, num_classes, embedding_size)).astype(jnp.bfloat16)

    ref = adaface_loss_reference(embeddings, labels, prototypes,
                                 s=64.0, angle_margin=0.5,
                                 additive_margin=0.0, h=0.33)
    ref = jax.block_until_ready(ref)

    # class_tile=128 exercises the streaming / online-LSE / ragged-mask path
    # (2 class tiles); class_tile=num_classes exercises the single-tile path.
    for ct in (128, num_classes):
        loss, _, _ = adaface_loss_forward(embeddings, labels, prototypes,
                                          s=64.0, angle_margin=0.5,
                                          additive_margin=0.0, h=0.33,
                                          class_tile=ct)
        loss = jax.block_until_ready(loss)
        if (not bool(jnp.isfinite(loss))
                or not bool(jnp.allclose(loss, ref, rtol=2e-2, atol=5e-2))):
            raise RuntimeError(
                f"kernel loss {float(loss)} != reference {float(ref)} "
                f"(class_tile={ct})")
    print("KERNEL_OK")
</pallas_src>

<mosaic_0001>
module attributes {stable_mosaic.version = 11 : i64} {
  func.func @kernel(%arg0: i32, %arg1: i32, %arg2: memref<8x128xbf16, #tpu.memory_space<vmem>>, %arg3: memref<8x1xf32, #tpu.memory_space<vmem>>, %arg4: memref<8x1xi32, #tpu.memory_space<vmem>>, %arg5: memref<128x128xbf16, #tpu.memory_space<vmem>>, %arg6: memref<8x1xf32, #tpu.memory_space<vmem>>, %arg7: memref<8x1xf32, #tpu.memory_space<vmem>>, %arg8: memref<8x1xf32, #tpu.memory_space<vmem>>) attributes {dimension_semantics = [#tpu.dimension_semantics<parallel>, #tpu.dimension_semantics<arbitrary>], iteration_bounds = array<i64: 1, 2>, scalar_prefetch = 0 : i64, scratch_operands = 2 : i64, tpu.core_type = #tpu.core_type<tc>, window_params = [{transform_indices = @transform_0, window_bounds = array<i64: 8, 128>}, {transform_indices = @transform_1, window_bounds = array<i64: 8, 1>}, {transform_indices = @transform_2, window_bounds = array<i64: 8, 1>}, {transform_indices = @transform_3, window_bounds = array<i64: 128, 128>}, {transform_indices = @transform_4, window_bounds = array<i64: 8, 1>}]} {
    %c0_i32 = arith.constant 0 : i32
    %0 = arith.cmpi eq, %arg1, %c0_i32 : i32
    %1 = arith.extui %0 : i1 to i32
    %c0_i32_0 = arith.constant 0 : i32
    %2 = arith.cmpi ne, %1, %c0_i32_0 : i32
    scf.if %2 {
      %cst_20 = arith.constant -1.000000e+30 : f32
      %43 = vector.broadcast %cst_20 : f32 to vector<8x1xf32>
      %c0_21 = arith.constant 0 : index
      %c0_22 = arith.constant 0 : index
      %44 = vector.load %arg7[%c0_21, %c0_22] : memref<8x1xf32, #tpu.memory_space<vmem>>, vector<8x1xf32>
      tpu.vector_store %arg7[%c0_21, %c0_22], %43 {strides = array<i32>} : memref<8x1xf32, #tpu.memory_space<vmem>>, vector<8x1xf32>,
      %cst_23 = arith.constant 0.000000e+00 : f32
      %45 = vector.broadcast %cst_23 : f32 to vector<8x1xf32>
      %c0_24 = arith.constant 0 : index
      %c0_25 = arith.constant 0 : index
      %46 = vector.load %arg8[%c0_24, %c0_25] : memref<8x1xf32, #tpu.memory_space<vmem>>, vector<8x1xf32>
      tpu.vector_store %arg8[%c0_24, %c0_25], %45 {strides = array<i32>} : memref<8x1xf32, #tpu.memory_space<vmem>>, vector<8x1xf32>,
    } else {
    }
    %c0 = arith.constant 0 : index
    %c0_1 = arith.constant 0 : index
    %3 = vector.load %arg2[%c0, %c0_1] : memref<8x128xbf16, #tpu.memory_space<vmem>>, vector<8x128xbf16>
    %c0_2 = arith.constant 0 : index
    %c0_3 = arith.constant 0 : index
    %4 = vector.load %arg5[%c0_2, %c0_3] : memref<128x128xbf16, #tpu.memory_space<vmem>>, vector<128x128xbf16>
    %cst = arith.constant dense<0.000000e+00> : vector<8x128xf32>
    %5 = tpu.matmul %3, %4, %cst {dimension_numbers = #tpu.dot_dimension_numbers<[1], [1], [0], [0], [0, 0, 1, 0], [], []>} : vector<8x128xbf16>, vector<128x128xbf16>, vector<8x128xf32> -> vector<8x128xf32>
    %6 = tpu.iota {dimensions = array<i32: 1>} : vector<1x128xi32>
    %c128_i32 = arith.constant 128 : i32
    %7 = arith.muli %arg1, %c128_i32 : i32
    %8 = vector.broadcast %7 : i32 to vector<1x128xi32>
    %9 = arith.addi %6, %8 : vector<1x128xi32>
    %c0_4 = arith.constant 0 : index
    %c0_5 = arith.constant 0 : index
    %10 = vector.load %arg4[%c0_4, %c0_5] : memref<8x1xi32, #tpu.memory_space<vmem>>, vector<8x1xi32>
    %11 = vector.broadcast %9 : vector<1x128xi32> to vector<8x128xi32>
    %12 = vector.broadcast %10 : vector<8x1xi32> to vector<8x128xi32>
    %13 = arith.cmpi eq, %11, %12 : vector<8x128xi32>
    %c0_6 = arith.constant 0 : index
    %c0_7 = arith.constant 0 : index
    %14 = vector.load %arg3[%c0_6, %c0_7] : memref<8x1xf32, #tpu.memory_space<vmem>>, vector<8x1xf32>
    %15 = vector.shape_cast %14 : vector<8x1xf32> to vector<8x1xf32>
    %16 = vector.broadcast %15 : vector<8x1xf32> to vector<8x128xf32>
    %17 = arith.select %13, %16, %5 : vector<8x128xi1>, vector<8x128xf32>
    %c182_i32 = arith.constant 182 : i32
    %18 = vector.broadcast %c182_i32 : i32 to vector<1x128xi32>
    %19 = arith.cmpi slt, %9, %18 : vector<1x128xi32>
    %cst_8 = arith.constant -1.000000e+30 : f32
    %20 = vector.shape_cast %19 : vector<1x128xi1> to vector<1x128xi1>
    %21 = vector.broadcast %20 : vector<1x128xi1> to vector<8x128xi1>
    %22 = vector.broadcast %cst_8 : f32 to vector<8x128xf32>
    %23 = arith.select %21, %17, %22 : vector<8x128xi1>, vector<8x128xf32>
    %c0_9 = arith.constant 0 : index
    %c0_10 = arith.constant 0 : index
    %24 = vector.load %arg7[%c0_9, %c0_10] : memref<8x1xf32, #tpu.memory_space<vmem>>, vector<8x1xf32>
    %cst_11 = arith.constant dense<0xFF800000> : vector<8xf32>
    %25 = vector.multi_reduction <maximumf>, %23, %cst_11 [1] : vector<8x128xf32> to vector<8xf32>
    %26 = vector.shape_cast %25 : vector<8xf32> to vector<8x1xf32>
    %27 = arith.maximumf %24, %26 : vector<8x1xf32>
    %c0_12 = arith.constant 0 : index
    %c0_13 = arith.constant 0 : index
    %28 = vector.load %arg8[%c0_12, %c0_13] : memref<8x1xf32, #tpu.memory_space<vmem>>, vector<8x1xf32>
    %29 = arith.subf %24, %27 : vector<8x1xf32>
    %30 = math.exp %29 : vector<8x1xf32>
    %31 = arith.mulf %28, %30 : vector<8x1xf32>
    %32 = vector.broadcast %27 : vector<8x1xf32> to vector<8x128xf32>
    %33 = arith.subf %23, %32 : vector<8x128xf32>
    %34 = math.exp %33 : vector<8x128xf32>
    %cst_14 = arith.constant dense<0.000000e+00> : vector<8xf32>
    %35 = vector.multi_reduction <add>, %34, %cst_14 [1] : vector<8x128xf32> to vector<8xf32>
    %36 = vector.shape_cast %35 : vector<8xf32> to vector<8x1xf32>
    %37 = arith.addf %31, %36 : vector<8x1xf32>
    %c0_15 = arith.constant 0 : index
    %c0_16 = arith.constant 0 : index
    %38 = vector.load %arg8[%c0_15, %c0_16] : memref<8x1xf32, #tpu.memory_space<vmem>>, vector<8x1xf32>
    tpu.vector_store %arg8[%c0_15, %c0_16], %37 {strides = array<i32>} : memref<8x1xf32, #tpu.memory_space<vmem>>, vector<8x1xf32>,
    %c0_17 = arith.constant 0 : index
    %c0_18 = arith.constant 0 : index
    %39 = vector.load %arg7[%c0_17, %c0_18] : memref<8x1xf32, #tpu.memory_space<vmem>>, vector<8x1xf32>
    tpu.vector_store %arg7[%c0_17, %c0_18], %27 {strides = array<i32>} : memref<8x1xf32, #tpu.memory_space<vmem>>, vector<8x1xf32>,
    %c1_i32 = arith.constant 1 : i32
    %40 = arith.cmpi eq, %arg1, %c1_i32 : i32
    %41 = arith.extui %40 : i1 to i32
    %c0_i32_19 = arith.constant 0 : i32
    %42 = arith.cmpi ne, %41, %c0_i32_19 : i32
    scf.if %42 {
      %c0_20 = arith.constant 0 : index
      %c0_21 = arith.constant 0 : index
      %43 = vector.load %arg7[%c0_20, %c0_21] : memref<8x1xf32, #tpu.memory_space<vmem>>, vector<8x1xf32>
      %c0_22 = arith.constant 0 : index
      %c0_23 = arith.constant 0 : index
      %44 = vector.load %arg8[%c0_22, %c0_23] : memref<8x1xf32, #tpu.memory_space<vmem>>, vector<8x1xf32>
      %45 = math.log %44 : vector<8x1xf32>
      %46 = arith.addf %43, %45 : vector<8x1xf32>
      %c0_24 = arith.constant 0 : index
      %c0_25 = arith.constant 0 : index
      %47 = vector.load %arg3[%c0_24, %c0_25] : memref<8x1xf32, #tpu.memory_space<vmem>>, vector<8x1xf32>
      %48 = arith.subf %46, %47 : vector<8x1xf32>
      %c0_26 = arith.constant 0 : index
      %c0_27 = arith.constant 0 : index
      %49 = vector.load %arg6[%c0_26, %c0_27] : memref<8x1xf32, #tpu.memory_space<vmem>>, vector<8x1xf32>
      tpu.vector_store %arg6[%c0_26, %c0_27], %48 {strides = array<i32>} : memref<8x1xf32, #tpu.memory_space<vmem>>, vector<8x1xf32>,
    } else {
    }
    return
  }
  func.func @transform_0(%arg0: i32, %arg1: i32) -> (i32, i32) {
    %c0_i32 = arith.constant 0 : i32
    %c0_i32_0 = arith.constant 0 : i32
    return %arg0, %c0_i32 : i32, i32
  }
  func.func @transform_1(%arg0: i32, %arg1: i32) -> (i32, i32) {
    %c0_i32 = arith.constant 0 : i32
    %c0_i32_0 = arith.constant 0 : i32
    return %arg0, %c0_i32 : i32, i32
  }
  func.func @transform_2(%arg0: i32, %arg1: i32) -> (i32, i32) {
    %c0_i32 = arith.constant 0 : i32
    %c0_i32_0 = arith.constant 0 : i32
    return %arg0, %c0_i32 : i32, i32
  }
  func.func @transform_3(%arg0: i32, %arg1: i32) -> (i32, i32) {
    %c0_i32 = arith.constant 0 : i32
    %c0_i32_0 = arith.constant 0 : i32
    return %arg1, %c0_i32 : i32, i32
  }
  func.func @transform_4(%arg0: i32, %arg1: i32) -> (i32, i32) {
    %c0_i32 = arith.constant 0 : i32
    %c0_i32_0 = arith.constant 0 : i32
    return %arg0, %c0_i32 : i32, i32
  }
}

</mosaic_0001>

<bundles_post_ra>
// kernel: tpu_custom_call.1
= control target key start
LH: loop header
LB: loop body
LE: loop exit
PB: predicated region body
PF: predicated region fallthrough
CT: control target
= control target key end

     0   :  { %9 = vsyncpa [#allocation5], 0  ;;  %s890_s0 = inlined_call_operand.vmem [shape: bf16[8,128], index: 0, kind: input, shape index: {}]   ;;  %s891_s1 = inlined_call_operand.vmem [shape: f32[8,1], index: 1, kind: input, shape index: {}]   ;;  %s892_s2 = inlined_call_operand.vmem [shape: s32[8,1], index: 2, kind: input, shape index: {}]   ;;  %s893_s3 = inlined_call_operand.hbm [shape: bf16[256,128], index: 3, kind: input, shape index: {}]   ;;  %s894_s4 = inlined_call_operand.vmem [shape: f32[8,1], index: 4, kind: output, shape index: {}]  }
   0x1   :  { %11 = vsyncpa [#allocation5 + $0x1], 0  ;;  %s776_s15 = smov 0   ;;  %s778_s16 = smov 0  }
   0x2   :  { %s780_s17 = smov 0   ;;  %s782_s18 = smov 0  }
   0x3   :  { %s784_s19 = smov 0   ;;  %s786_s20 = smov 0  }
   0x4 LB: > { %s538_s21 = sadd.s32 4294967295, %s744_s20   ;;  %s26_s22 = sadd.s32 1, %s740_s19  ;;  %s744_s20 = sphi %s786_s20, %s17_s20   ;;  %s740_s19 = sphi %s784_s19, %s901_s19   ;;  %s736_s18 = sphi %s782_s18, %s900_s18   ;;  %s732_s17 = sphi %s780_s17, %s899_s17   ;;  %s728_s16 = sphi %s778_s16, %s898_s16   ;;  %s724_s15 = sphi %s776_s15, %s897_s15  }
   0x5   : > { %p27_p0 = scmp.ge.s32.totalorder %s26_s22, 2  ;;  %s114_s23 = sadd.s32 1, %s732_s17 }
   0x6   : > { %p121_p1 = scmp.ne.s32.totalorder %s732_s17, %s728_s16  ;;  %p122_p2 = scmp.eq.s32.totalorder %s744_s20, 0 }
   0x7   : > { %s903_s22 = smov (%p27_p0, %s26_s22), 0  ;;  %p127_p4 = scmp.ne.s32.totalorder %s728_s16, %s724_s15 }
   0x8   : > { %p812_p3 = por %p122_p2, %p121_p1  ;;  %s111_s25 = ssub.s32 %s740_s19, %s903_s22 }
   0x9   : > { %p128_p5 = scmp.eq.s32.totalorder %s538_s21, 0  ;;  %p112_p6 = scmp.eq.s32.totalorder %s111_s25, 0 }
   0xa   : > { %p602_p8 = scmp.lt.s32.totalorder %s744_s20, 2  ;;  %s198_s28 = sand.u32 1, %s732_s17  }
   0xb   : > { %p819_p7 = por %p128_p5, %p127_p4  ;;  %s587_s29 = sshll.u32 %s740_s19, 6 }
   0xc   : > { %s825_s27 = scalar_select %p112_p6, %s732_s17, %s114_s23  }
   0xd   : > { %s544_s30 = sshll.u32 %s198_s28, 6  ;;  %s207_s7 = scalar_lea.hbm %s893_s3, %s587_s29 }
   0xe   : > { %s208_s8 = sshll.u32 %s207_s7, 4  ;;  %s202_s9 = scalar_lea.vmem [#allocation4], %s544_s30  ;;  %s209_s8 = int_to_ptr.hbm [resolvable:$true] %s208_s8 }
   0xf   : > { %s210_s10 = sshll.u32 %s202_s9, 4  ;;  %p599_p9 = pnand %p602_p8, %p812_p3  ;;  %s211_s10 = int_to_ptr.vmem [resolvable:$true] %s210_s10 }
  0x10   : > { %p547_p10 = scmp.ge.s32.totalorder %s744_s20, 1  ;;  %p218_p11 = scmp.lt.s32.totalorder %s744_s20, 3 }
  0x11   : > { %s199_s11 = scalar_lea.sflag [#allocation5], %s198_s28  ;;  %s746_s12 = smov 64  }
  0x12   : > { %s747_s13 = smov 4   ;;  %p219_p12 = pnand %p547_p10, %p218_p11 }
  0x13   : > { %601 = dma.hbm_to_vmem [thread:$0]  (!%p599_p9), %s209_s8, 1024, %s211_s10, %s199_s11, %s746_s12, %s746_s12, %s747_s13  }
  0x14   : > { %222 = sbr.rel (%p219_p12) target bundleno = 612 (0x264), region = 36  ;;  %s224_s14 = sand.u32 (!%p219_p12), 1, %s728_s16  }
  0x15   : > { %s548_s15 = sshll.u32 (!%p219_p12), %s224_s14, 6  ;;  %s225_s21 = scalar_lea.sflag (!%p219_p12), [#allocation5], %s224_s14 }
  0x16   : > { %s837_s23 = scalar_lea.vmem (!%p219_p12), [#allocation4], %s548_s15 }
  0x19   : > { %719 = dma.done.wait (%p819_p7), %s225_s21, 1024  }
  0x1a   : > { %721 = vsyncadd (%p819_p7), %s225_s21, 4294966272  ;;  %p549_p13 = scmp.ne.s32.totalorder %s736_s18, 0 }
  0x1c   : > { %285 = sbr.rel (%p549_p13) target bundleno = 36 (0x24), region = 44 }
  0x21   : > { %vm286_vm0 = vcmask 7168   ;;  %v748_v0 = vmov -1e+30   ;;  %v749_v1 = vmov 0.0  }
  0x22   : > { %287 = vst.msk [vmem:[#allocation2] sm:$0xff] %vm286_vm0, %v748_v0 }
  0x23   : > { %288 = vst.msk [vmem:[#allocation3] sm:$0xff] %vm286_vm0, %v749_v1 }
  0x24 PF: > { %v595_v2 = vld [vmem:[%s837_s23 + $0x38] sm:$0xff]  ;;  %v594_v3 = vld [vmem:[%s837_s23 + $0x30] sm:$0xff]  ;;  %v593_v4 = vld [vmem:[%s837_s23 + $0x28] sm:$0xff]  ;;  %v750_v7 = vmov 0   ;;  %v367_v14 = vlaneseq  ;;  %s582_s5 = sshll.u32 %s736_s18, 7  ;;  %vm408_vm3 = vcmask 7168  }
  0x25   : > { %354 = vmatpush.bf16.xpose.msra.mxu0 %v595_v2  ;;  %v592_v5 = vld [vmem:[%s837_s23 + $0x20] sm:$0xff]  ;;  %v372_v6 = vld [vmem:[%s892_s2] sm:$0xff]  ;;  %656 = vset.pattern.permute.xlu0 %v750_v7  ;;  %v591_v8 = vld [vmem:[%s837_s23 + $0x18] sm:$0xff]  ;;  %v370_v17 = vstv %s582_s5  ;;  %p583_p0 = scmp.ne.s32.totalorder %s736_s18, 1 }
  0x26   : > { %657 = vset.pattern.permute.xlu1 %v750_v7  ;;  %374 = vperm.xlu0 %656, %v372_v6   ;;  %v377_v9 = vld [vmem:[%s891_s1] sm:$0xff]  ;;  %v589_v11 = vld [vmem:[%s837_s23 + $0x8] sm:$0xff]  ;;  %v588_v12 = vld [vmem:[%s837_s23] sm:$0xff]  ;;  %v368_v16 = vand.u32 127, %v367_v14 }
  0x27   : > { %v590_v10 = vld [vmem:[%s837_s23 + $0x10] sm:$0xff] }
  0x28   : > { %v289_v13 = vld [vmem:[%s890_s0] sm:$0xf]  ;;  %v371_v18 = vadd.s32 %v370_v17, %v368_v16 }
  0x29   : > { %v388_v24 = vld [vmem:[#allocation2] sm:$0xff] }
  0x2a   : > { %vm384_vm1 = vcmp.lt.s32.totalorder %v371_v18, 182  ;;  %v392_v34 = vld [vmem:[#allocation3] sm:$0xff] }
  0x2d   : > { %355 = vmatpush.bf16.xpose.msra.mxu0 %v594_v3 }
  0x2e   : > { %380 = vperm.xlu0 %656, %v377_v9  }
  0x35   : > { %356 = vmatpush.bf16.xpose.msra.mxu0 %v593_v4 }
  0x3d   : > { %357 = vmatpush.bf16.xpose.msra.mxu0 %v592_v5 }
  0x45   : > { %358 = vmatpush.bf16.xpose.msra.mxu0 %v591_v8 }
  0x4d   : > { %359 = vmatpush.bf16.xpose.msra.mxu0 %v590_v10 }
  0x55   : > { %360 = vmatpush.bf16.xpose.msra.mxu0 %v589_v11 }
  0x5d   : > { %361 = vmatpush.bf16.xpose.msra.mxu0 %v588_v12 }
  0x64   : > { %362 = vmatmul.bf16.vlgmr.msra.gmra.mxu0 %v289_v13 }
  0x98   : > { %v375_v15 = vpop.permute.xlu0 %374 }
  0x99   : > { %vm376_vm2 = vcmp.eq.s32.totalorder %v371_v18, %v375_v15 }
  0xa0   : > { %v381_v19 = vpop.permute.xlu0 %380 }
  0xe1   : > { %v363_v20 = vpop.f32.mrf.mxu0 }
  0xe2   : > { %v383_v21 = vsel %vm376_vm2, %v381_v19, %v363_v20 }
  0xe3   : > { %v387_v22 = vsel %vm384_vm1, %v383_v21, -1e+30 }
  0xe4   : > { %389 = vmax.xlane.f32.xlu1 %v387_v22 }
  0xe9   : > { %v365_v23 = vpop.f32.mrf.mxu0 }
 0x157   : > { %v390_v25 = vpop.xlane.xlu1 %389 }
 0x158   : > { %v391_v26 = vmax.f32 %v388_v24, %v390_v25 }
 0x15a   : > { %v393_v27 = vsub.f32 %v388_v24, %v391_v26  ;;  %410 = vst.msk [vmem:[#allocation2] sm:$0xff] %vm408_vm3, %v391_v26  ;;  %399 = vperm.xlu1 %657, %v391_v26  }
 0x15c   : > { %v394_v32 = vmul.f32 1.442695, %v393_v27 }
 0x1cc   : > { %v400_v28 = vpop.permute.xlu1 %399 }
 0x1cd   : > { %v402_v29 = vsub.f32 %v387_v22, %v400_v28 }
 0x1cf   : > { %v403_v30 = vmul.f32 1.442695, %v402_v29 }
 0x1d1   : > { %658 = vpow2.f32 %v403_v30 }
 0x1d2   : > { %660 = vpow2.f32 %v394_v32 }
 0x1d7   : > { %v659_v31 = vpop.eup %658 }
 0x1d8   : > { %405 = vadd.xlane.f32.xlu2 %v659_v31  ;;  %v661_v33 = vpop.eup %660 }
 0x1d9   : > { %v396_v35 = vmul.f32 %v661_v33, %v392_v34 }
 0x24a   : > { %414 = sbr.rel (%p583_p0) target bundleno = 612 (0x264), region = 48 }
 0x24b   : > { %v406_v36 = vpop.xlane.xlu2 %405 }
 0x24c   : > { %v407_v37 = vadd.f32 %v406_v36, %v396_v35 }
 0x24e   : > { %409 = vst.msk [vmem:[#allocation3] sm:$0xff] %vm408_vm3, %v407_v37 }
 0x24f   : > { %v415_v40 = vld [vmem:[#allocation2] sm:$0xff] }
 0x250   : > { %v420_v42 = vld [vmem:[%s891_s1] sm:$0xff] }
 0x255   : > { %v416_v38 = vld [vmem:[#allocation3] sm:$0xff] }
 0x256   : > { %662 = vlog2.f32 %v416_v38 }
 0x25c   : > { %v663_v39 = vpop.eup %662 }
 0x25d   : > { %v418_v41 = vmul.f32 0.6931472, %v663_v39 }
 0x25f   : > { %v419_v43 = vadd.f32 %v418_v41, %v415_v40 }
 0x261   : > { %v421_v44 = vsub.f32 %v419_v43, %v420_v42 }
 0x263   : > { %422 = vst.msk [vmem:[%s894_s4] sm:$0xff] %vm408_vm3, %v421_v44 }
 0x264 PF: > { %s17_s20 = sadd.s32 1, %s744_s20   ;;  %s897_s15 = smov %s728_s16 }
 0x265   : > { %p14_p1 = scmp.ge.s32.totalorder %s17_s20, 4   ;;  %s898_s16 = smov %s732_s17 }
 0x266   : > { %s899_s17 = smov %s825_s27  ;;  %s900_s18 = smov %s740_s19 }
 0x267   : > { %s901_s19 = smov %s903_s22  ;;  %16 = sbr.rel (!%p14_p1) target bundleno = 4 (0x4), region = 93 }
 0x26c   :  { %442 = vsyncpa [#allocation5], 1 }
 0x26d   :  { %444 = vsyncpa [#allocation5 + $0x1], 1 }

</bundles_post_ra>
